<compile_context>
chip_gen: v6e
topology: v6e:2x2x1
jax: 0.10.0
libtpu: 0.0.40
codegen_flags: <defaults>
</compile_context>

<pallas_src>
import jax
import jax.numpy as jnp
from jax.experimental import pallas as pl
from jax.experimental.pallas import tpu as pltpu

NEG_SLOPE = 0.01  # nn.LeakyReLU default

# Layer dims: 2 -> 4 -> 3 -> 2
F0, F1, F2, F3 = 2, 4, 3, 2

# Offsets into the flattened parameter vector (row-major weights [in, out], then bias).
OFF_W1 = 0
OFF_B1 = OFF_W1 + F0 * F1          # 8
OFF_W2 = OFF_B1 + F1               # 12
OFF_B2 = OFF_W2 + F1 * F2          # 24
OFF_W3 = OFF_B2 + F2               # 27
OFF_B3 = OFF_W3 + F2 * F3          # 33
N_PARAMS = OFF_B3 + F3             # 35


def _leaky_relu(x):
    return jnp.where(x >= 0, x, NEG_SLOPE * x)


def mlp_tanh_kernel(p_ref, x_ref, o_ref):
    """p_ref: SMEM (N_PARAMS,) f32; x_ref: VMEM (F0, tn); o_ref: VMEM (F3, tn).

    Feature-major layout: lanes carry the batch.  Each layer is an unrolled set
    of scalar-weight * row FMAs on the VPU (no MXU).
    """
    # Load input rows as (1, tn) slabs.
    rows = [x_ref[i:i + 1, :].astype(jnp.float32) for i in range(F0)]

    def dense(rows_in, w_off, b_off, fan_in, fan_out):
        outs = []
        for o in range(fan_out):
            acc = rows_in[0] * p_ref[w_off + 0 * fan_out + o]
            for i in range(1, fan_in):
                acc = acc + rows_in[i] * p_ref[w_off + i * fan_out + o]
            outs.append(acc + p_ref[b_off + o])
        return outs

    h = dense(rows, OFF_W1, OFF_B1, F0, F1)
    h = [_leaky_relu(v) for v in h]
    h = dense(h, OFF_W2, OFF_B2, F1, F2)
    h = [_leaky_relu(v) for v in h]
    h = dense(h, OFF_W3, OFF_B3, F2, F3)

    o_ref[...] = jnp.concatenate([jnp.tanh(v) for v in h], axis=0).astype(o_ref.dtype)


def net_forward(x, params, *, tn=2048):
    """x: [N, 2] float32 -> [N, 2] float32."""
    w1, b1, w2, b2, w3, b3 = params
    n, f_in = x.shape
    assert f_in == F0
    f_out = F3

    # Flatten all parameters (35 floats) into one SMEM-resident vector.
    p = jnp.concatenate([w1.reshape(-1), b1.reshape(-1),
                         w2.reshape(-1), b2.reshape(-1),
                         w3.reshape(-1), b3.reshape(-1)]).astype(jnp.float32)
    assert p.shape[0] == N_PARAMS

    # Feature-major / lane-dense: batch on the lane axis.
    xt = x.T  # (F0, n)

    if n <= tn:
        # Single block covering the whole (possibly ragged) batch -> no pad copy.
        tn_eff = n
        n_pad = n
    else:
        tn_eff = tn
        n_pad = pl.cdiv(n, tn_eff) * tn_eff
        if n_pad != n:
            # TODO(synk): a masked write on the last block would avoid this copy;
            # here only the tail tile is padded (extra cols are sliced off below).
            xt = jnp.pad(xt, ((0, 0), (0, n_pad - n)))

    grid = (n_pad // tn_eff,)

    out_t = pl.pallas_call(
        mlp_tanh_kernel,
        out_shape=jax.ShapeDtypeStruct((f_out, n_pad), jnp.float32),
        grid_spec=pltpu.PrefetchScalarGridSpec(
            num_scalar_prefetch=0,
            grid=grid,
            in_specs=[
                # All 35 params as scalars in SMEM.
                pl.BlockSpec(memory_space=pltpu.MemorySpace.SMEM),
                # Lane-dense activation tile: (2, tn).
                pl.BlockSpec((F0, tn_eff), lambda i: (0, i)),
            ],
            out_specs=pl.BlockSpec((f_out, tn_eff), lambda i: (0, i)),
        ),
        compiler_params=pltpu.CompilerParams(
            dimension_semantics=("parallel",)),
        cost_estimate=pl.CostEstimate(
            flops=52 * n_pad,                       # 2*(2*4 + 4*3 + 3*2) per row
            transcendentals=2 * n_pad,              # tanh on 2 outputs per row
            bytes_accessed=(F0 + F3) * 4 * n_pad),  # in + out, f32
    )(p, xt)

    return out_t[:, :n].T


def init_params(key):
    """Deterministic init mimicking PyTorch Linear (uniform +/- 1/sqrt(fan_in))."""
    dims = [(F0, F1), (F1, F2), (F2, F3)]
    params = []
    for (fan_in, fan_out) in dims:
        key, kw, kb = jax.random.split(key, 3)
        bound = 1.0 / jnp.sqrt(fan_in)
        w = jax.random.uniform(kw, (fan_in, fan_out), jnp.float32, -bound, bound)
        b = jax.random.uniform(kb, (fan_out,), jnp.float32, -bound, bound)
        params += [w, b]
    return tuple(params)


def net_forward_ref(x, params):
    w1, b1, w2, b2, w3, b3 = params
    h = _leaky_relu(x @ w1 + b1)
    h = _leaky_relu(h @ w2 + b2)
    return jnp.tanh(h @ w3 + b3)


if __name__ == "__main__":
    key = jax.random.PRNGKey(0)
    kp, kx, kx2 = jax.random.split(key, 3)
    params = init_params(kp)

    # Small input consistent with the module: N points, 2 features each.
    x = jax.random.normal(kx, (8, 2), jnp.float32)
    out = net_forward(x, params)
    jax.block_until_ready(out)
    ref = net_forward_ref(x, params)
    assert out.shape == (8, 2)
    assert jnp.allclose(out, ref, atol=1e-5, rtol=1e-5)

    # Also exercise the multi-tile (grid > 1) ragged path.
    x2 = jax.random.normal(kx2, (300, 2), jnp.float32)
    out2 = net_forward(x2, params, tn=128)
    jax.block_until_ready(out2)
    ref2 = net_forward_ref(x2, params)
    assert out2.shape == (300, 2)
    assert jnp.allclose(out2, ref2, atol=1e-5, rtol=1e-5)

    print("KERNEL_OK")
</pallas_src>

<mosaic_0001>
module attributes {stable_mosaic.version = 11 : i64} {
  func.func @mlp_tanh_kernel(%arg0: i32, %arg1: memref<35xf32, #tpu.memory_space<smem>>, %arg2: memref<2x8xf32, #tpu.memory_space<vmem>>, %arg3: memref<2x8xf32, #tpu.memory_space<vmem>>) attributes {dimension_semantics = [#tpu.dimension_semantics<parallel>], iteration_bounds = array<i64: 1>, scalar_prefetch = 0 : i64, scratch_operands = 0 : i64, tpu.core_type = #tpu.core_type<tc>, window_params = [{transform_indices = @transform_0, window_bounds = array<i64: 35>}, {transform_indices = @transform_1, window_bounds = array<i64: 2, 8>}, {transform_indices = @transform_2, window_bounds = array<i64: 2, 8>}]} {
    %c0 = arith.constant 0 : index
    %c0_0 = arith.constant 0 : index
    %0 = vector.load %arg2[%c0, %c0_0] : memref<2x8xf32, #tpu.memory_space<vmem>>, vector<1x8xf32>
    %c1 = arith.constant 1 : index
    %c0_1 = arith.constant 0 : index
    %1 = vector.load %arg2[%c1, %c0_1] : memref<2x8xf32, #tpu.memory_space<vmem>>, vector<1x8xf32>
    %c0_2 = arith.constant 0 : index
    %2 = memref.load %arg1[%c0_2] : memref<35xf32, #tpu.memory_space<smem>>
    %3 = vector.broadcast %2 : f32 to vector<1x8xf32>
    %4 = arith.mulf %0, %3 : vector<1x8xf32>
    %c4 = arith.constant 4 : index
    %5 = memref.load %arg1[%c4] : memref<35xf32, #tpu.memory_space<smem>>
    %6 = vector.broadcast %5 : f32 to vector<1x8xf32>
    %7 = arith.mulf %1, %6 : vector<1x8xf32>
    %8 = arith.addf %4, %7 : vector<1x8xf32>
    %c8 = arith.constant 8 : index
    %9 = memref.load %arg1[%c8] : memref<35xf32, #tpu.memory_space<smem>>
    %10 = vector.broadcast %9 : f32 to vector<1x8xf32>
    %11 = arith.addf %8, %10 : vector<1x8xf32>
    %c1_3 = arith.constant 1 : index
    %12 = memref.load %arg1[%c1_3] : memref<35xf32, #tpu.memory_space<smem>>
    %13 = vector.broadcast %12 : f32 to vector<1x8xf32>
    %14 = arith.mulf %0, %13 : vector<1x8xf32>
    %c5 = arith.constant 5 : index
    %15 = memref.load %arg1[%c5] : memref<35xf32, #tpu.memory_space<smem>>
    %16 = vector.broadcast %15 : f32 to vector<1x8xf32>
    %17 = arith.mulf %1, %16 : vector<1x8xf32>
    %18 = arith.addf %14, %17 : vector<1x8xf32>
    %c9 = arith.constant 9 : index
    %19 = memref.load %arg1[%c9] : memref<35xf32, #tpu.memory_space<smem>>
    %20 = vector.broadcast %19 : f32 to vector<1x8xf32>
    %21 = arith.addf %18, %20 : vector<1x8xf32>
    %c2 = arith.constant 2 : index
    %22 = memref.load %arg1[%c2] : memref<35xf32, #tpu.memory_space<smem>>
    %23 = vector.broadcast %22 : f32 to vector<1x8xf32>
    %24 = arith.mulf %0, %23 : vector<1x8xf32>
    %c6 = arith.constant 6 : index
    %25 = memref.load %arg1[%c6] : memref<35xf32, #tpu.memory_space<smem>>
    %26 = vector.broadcast %25 : f32 to vector<1x8xf32>
    %27 = arith.mulf %1, %26 : vector<1x8xf32>
    %28 = arith.addf %24, %27 : vector<1x8xf32>
    %c10 = arith.constant 10 : index
    %29 = memref.load %arg1[%c10] : memref<35xf32, #tpu.memory_space<smem>>
    %30 = vector.broadcast %29 : f32 to vector<1x8xf32>
    %31 = arith.addf %28, %30 : vector<1x8xf32>
    %c3 = arith.constant 3 : index
    %32 = memref.load %arg1[%c3] : memref<35xf32, #tpu.memory_space<smem>>
    %33 = vector.broadcast %32 : f32 to vector<1x8xf32>
    %34 = arith.mulf %0, %33 : vector<1x8xf32>
    %c7 = arith.constant 7 : index
    %35 = memref.load %arg1[%c7] : memref<35xf32, #tpu.memory_space<smem>>
    %36 = vector.broadcast %35 : f32 to vector<1x8xf32>
    %37 = arith.mulf %1, %36 : vector<1x8xf32>
    %38 = arith.addf %34, %37 : vector<1x8xf32>
    %c11 = arith.constant 11 : index
    %39 = memref.load %arg1[%c11] : memref<35xf32, #tpu.memory_space<smem>>
    %40 = vector.broadcast %39 : f32 to vector<1x8xf32>
    %41 = arith.addf %38, %40 : vector<1x8xf32>
    %cst = arith.constant 0.000000e+00 : f32
    %42 = vector.broadcast %cst : f32 to vector<1x8xf32>
    %43 = arith.cmpf oge, %11, %42 : vector<1x8xf32>
    %cst_4 = arith.constant 0.00999999977 : f32
    %44 = vector.broadcast %cst_4 : f32 to vector<1x8xf32>
    %45 = arith.mulf %44, %11 : vector<1x8xf32>
    %46 = arith.select %43, %11, %45 : vector<1x8xi1>, vector<1x8xf32>
    %cst_5 = arith.constant 0.000000e+00 : f32
    %47 = vector.broadcast %cst_5 : f32 to vector<1x8xf32>
    %48 = arith.cmpf oge, %21, %47 : vector<1x8xf32>
    %cst_6 = arith.constant 0.00999999977 : f32
    %49 = vector.broadcast %cst_6 : f32 to vector<1x8xf32>
    %50 = arith.mulf %49, %21 : vector<1x8xf32>
    %51 = arith.select %48, %21, %50 : vector<1x8xi1>, vector<1x8xf32>
    %cst_7 = arith.constant 0.000000e+00 : f32
    %52 = vector.broadcast %cst_7 : f32 to vector<1x8xf32>
    %53 = arith.cmpf oge, %31, %52 : vector<1x8xf32>
    %cst_8 = arith.constant 0.00999999977 : f32
    %54 = vector.broadcast %cst_8 : f32 to vector<1x8xf32>
    %55 = arith.mulf %54, %31 : vector<1x8xf32>
    %56 = arith.select %53, %31, %55 : vector<1x8xi1>, vector<1x8xf32>
    %cst_9 = arith.constant 0.000000e+00 : f32
    %57 = vector.broadcast %cst_9 : f32 to vector<1x8xf32>
    %58 = arith.cmpf oge, %41, %57 : vector<1x8xf32>
    %cst_10 = arith.constant 0.00999999977 : f32
    %59 = vector.broadcast %cst_10 : f32 to vector<1x8xf32>
    %60 = arith.mulf %59, %41 : vector<1x8xf32>
    %61 = arith.select %58, %41, %60 : vector<1x8xi1>, vector<1x8xf32>
    %c12 = arith.constant 12 : index
    %62 = memref.load %arg1[%c12] : memref<35xf32, #tpu.memory_space<smem>>
    %63 = vector.broadcast %62 : f32 to vector<1x8xf32>
    %64 = arith.mulf %46, %63 : vector<1x8xf32>
    %c15 = arith.constant 15 : index
    %65 = memref.load %arg1[%c15] : memref<35xf32, #tpu.memory_space<smem>>
    %66 = vector.broadcast %65 : f32 to vector<1x8xf32>
    %67 = arith.mulf %51, %66 : vector<1x8xf32>
    %68 = arith.addf %64, %67 : vector<1x8xf32>
    %c18 = arith.constant 18 : index
    %69 = memref.load %arg1[%c18] : memref<35xf32, #tpu.memory_space<smem>>
    %70 = vector.broadcast %69 : f32 to vector<1x8xf32>
    %71 = arith.mulf %56, %70 : vector<1x8xf32>
    %72 = arith.addf %68, %71 : vector<1x8xf32>
    %c21 = arith.constant 21 : index
    %73 = memref.load %arg1[%c21] : memref<35xf32, #tpu.memory_space<smem>>
    %74 = vector.broadcast %73 : f32 to vector<1x8xf32>
    %75 = arith.mulf %61, %74 : vector<1x8xf32>
    %76 = arith.addf %72, %75 : vector<1x8xf32>
    %c24 = arith.constant 24 : index
    %77 = memref.load %arg1[%c24] : memref<35xf32, #tpu.memory_space<smem>>
    %78 = vector.broadcast %77 : f32 to vector<1x8xf32>
    %79 = arith.addf %76, %78 : vector<1x8xf32>
    %c13 = arith.constant 13 : index
    %80 = memref.load %arg1[%c13] : memref<35xf32, #tpu.memory_space<smem>>
    %81 = vector.broadcast %80 : f32 to vector<1x8xf32>
    %82 = arith.mulf %46, %81 : vector<1x8xf32>
    %c16 = arith.constant 16 : index
    %83 = memref.load %arg1[%c16] : memref<35xf32, #tpu.memory_space<smem>>
    %84 = vector.broadcast %83 : f32 to vector<1x8xf32>
    %85 = arith.mulf %51, %84 : vector<1x8xf32>
    %86 = arith.addf %82, %85 : vector<1x8xf32>
    %c19 = arith.constant 19 : index
    %87 = memref.load %arg1[%c19] : memref<35xf32, #tpu.memory_space<smem>>
    %88 = vector.broadcast %87 : f32 to vector<1x8xf32>
    %89 = arith.mulf %56, %88 : vector<1x8xf32>
    %90 = arith.addf %86, %89 : vector<1x8xf32>
    %c22 = arith.constant 22 : index
    %91 = memref.load %arg1[%c22] : memref<35xf32, #tpu.memory_space<smem>>
    %92 = vector.broadcast %91 : f32 to vector<1x8xf32>
    %93 = arith.mulf %61, %92 : vector<1x8xf32>
    %94 = arith.addf %90, %93 : vector<1x8xf32>
    %c25 = arith.constant 25 : index
    %95 = memref.load %arg1[%c25] : memref<35xf32, #tpu.memory_space<smem>>
    %96 = vector.broadcast %95 : f32 to vector<1x8xf32>
    %97 = arith.addf %94, %96 : vector<1x8xf32>
    %c14 = arith.constant 14 : index
    %98 = memref.load %arg1[%c14] : memref<35xf32, #tpu.memory_space<smem>>
    %99 = vector.broadcast %98 : f32 to vector<1x8xf32>
    %100 = arith.mulf %46, %99 : vector<1x8xf32>
    %c17 = arith.constant 17 : index
    %101 = memref.load %arg1[%c17] : memref<35xf32, #tpu.memory_space<smem>>
    %102 = vector.broadcast %101 : f32 to vector<1x8xf32>
    %103 = arith.mulf %51, %102 : vector<1x8xf32>
    %104 = arith.addf %100, %103 : vector<1x8xf32>
    %c20 = arith.constant 20 : index
    %105 = memref.load %arg1[%c20] : memref<35xf32, #tpu.memory_space<smem>>
    %106 = vector.broadcast %105 : f32 to vector<1x8xf32>
    %107 = arith.mulf %56, %106 : vector<1x8xf32>
    %108 = arith.addf %104, %107 : vector<1x8xf32>
    %c23 = arith.constant 23 : index
    %109 = memref.load %arg1[%c23] : memref<35xf32, #tpu.memory_space<smem>>
    %110 = vector.broadcast %109 : f32 to vector<1x8xf32>
    %111 = arith.mulf %61, %110 : vector<1x8xf32>
    %112 = arith.addf %108, %111 : vector<1x8xf32>
    %c26 = arith.constant 26 : index
    %113 = memref.load %arg1[%c26] : memref<35xf32, #tpu.memory_space<smem>>
    %114 = vector.broadcast %113 : f32 to vector<1x8xf32>
    %115 = arith.addf %112, %114 : vector<1x8xf32>
    %cst_11 = arith.constant 0.000000e+00 : f32
    %116 = vector.broadcast %cst_11 : f32 to vector<1x8xf32>
    %117 = arith.cmpf oge, %79, %116 : vector<1x8xf32>
    %cst_12 = arith.constant 0.00999999977 : f32
    %118 = vector.broadcast %cst_12 : f32 to vector<1x8xf32>
    %119 = arith.mulf %118, %79 : vector<1x8xf32>
    %120 = arith.select %117, %79, %119 : vector<1x8xi1>, vector<1x8xf32>
    %cst_13 = arith.constant 0.000000e+00 : f32
    %121 = vector.broadcast %cst_13 : f32 to vector<1x8xf32>
    %122 = arith.cmpf oge, %97, %121 : vector<1x8xf32>
    %cst_14 = arith.constant 0.00999999977 : f32
    %123 = vector.broadcast %cst_14 : f32 to vector<1x8xf32>
    %124 = arith.mulf %123, %97 : vector<1x8xf32>
    %125 = arith.select %122, %97, %124 : vector<1x8xi1>, vector<1x8xf32>
    %cst_15 = arith.constant 0.000000e+00 : f32
    %126 = vector.broadcast %cst_15 : f32 to vector<1x8xf32>
    %127 = arith.cmpf oge, %115, %126 : vector<1x8xf32>
    %cst_16 = arith.constant 0.00999999977 : f32
    %128 = vector.broadcast %cst_16 : f32 to vector<1x8xf32>
    %129 = arith.mulf %128, %115 : vector<1x8xf32>
    %130 = arith.select %127, %115, %129 : vector<1x8xi1>, vector<1x8xf32>
    %c27 = arith.constant 27 : index
    %131 = memref.load %arg1[%c27] : memref<35xf32, #tpu.memory_space<smem>>
    %132 = vector.broadcast %131 : f32 to vector<1x8xf32>
    %133 = arith.mulf %120, %132 : vector<1x8xf32>
    %c29 = arith.constant 29 : index
    %134 = memref.load %arg1[%c29] : memref<35xf32, #tpu.memory_space<smem>>
    %135 = vector.broadcast %134 : f32 to vector<1x8xf32>
    %136 = arith.mulf %125, %135 : vector<1x8xf32>
    %137 = arith.addf %133, %136 : vector<1x8xf32>
    %c31 = arith.constant 31 : index
    %138 = memref.load %arg1[%c31] : memref<35xf32, #tpu.memory_space<smem>>
    %139 = vector.broadcast %138 : f32 to vector<1x8xf32>
    %140 = arith.mulf %130, %139 : vector<1x8xf32>
    %141 = arith.addf %137, %140 : vector<1x8xf32>
    %c33 = arith.constant 33 : index
    %142 = memref.load %arg1[%c33] : memref<35xf32, #tpu.memory_space<smem>>
    %143 = vector.broadcast %142 : f32 to vector<1x8xf32>
    %144 = arith.addf %141, %143 : vector<1x8xf32>
    %c28 = arith.constant 28 : index
    %145 = memref.load %arg1[%c28] : memref<35xf32, #tpu.memory_space<smem>>
    %146 = vector.broadcast %145 : f32 to vector<1x8xf32>
    %147 = arith.mulf %120, %146 : vector<1x8xf32>
    %c30 = arith.constant 30 : index
    %148 = memref.load %arg1[%c30] : memref<35xf32, #tpu.memory_space<smem>>
    %149 = vector.broadcast %148 : f32 to vector<1x8xf32>
    %150 = arith.mulf %125, %149 : vector<1x8xf32>
    %151 = arith.addf %147, %150 : vector<1x8xf32>
    %c32 = arith.constant 32 : index
    %152 = memref.load %arg1[%c32] : memref<35xf32, #tpu.memory_space<smem>>
    %153 = vector.broadcast %152 : f32 to vector<1x8xf32>
    %154 = arith.mulf %130, %153 : vector<1x8xf32>
    %155 = arith.addf %151, %154 : vector<1x8xf32>
    %c34 = arith.constant 34 : index
    %156 = memref.load %arg1[%c34] : memref<35xf32, #tpu.memory_space<smem>>
    %157 = vector.broadcast %156 : f32 to vector<1x8xf32>
    %158 = arith.addf %155, %157 : vector<1x8xf32>
    %159 = math.tanh %144 : vector<1x8xf32>
    %160 = math.tanh %158 : vector<1x8xf32>
    %161 = tpu.concatenate %159, %160 in 0 : vector<1x8xf32>, vector<1x8xf32> -> vector<2x8xf32>
    %c0_17 = arith.constant 0 : index
    %c0_18 = arith.constant 0 : index
    %162 = vector.load %arg3[%c0_17, %c0_18] : memref<2x8xf32, #tpu.memory_space<vmem>>, vector<2x8xf32>
    tpu.vector_store %arg3[%c0_17, %c0_18], %161 {strides = array<i32>} : memref<2x8xf32, #tpu.memory_space<vmem>>, vector<2x8xf32>,
    return
  }
  func.func @transform_0(%arg0: i32) -> i32 {
    %c0_i32 = arith.constant 0 : i32
    %c0_i32_0 = arith.constant 0 : i32
    return %c0_i32 : i32
  }
  func.func @transform_1(%arg0: i32) -> (i32, i32) {
    %c0_i32 = arith.constant 0 : i32
    %c0_i32_0 = arith.constant 0 : i32
    return %c0_i32, %arg0 : i32, i32
  }
  func.func @transform_2(%arg0: i32) -> (i32, i32) {
    %c0_i32 = arith.constant 0 : i32
    %c0_i32_0 = arith.constant 0 : i32
    return %c0_i32, %arg0 : i32, i32
  }
}

</mosaic_0001>

<bundles_post_ra>
// kernel: tpu_custom_call.1
= control target key start
LH: loop header
LB: loop body
LE: loop exit
PB: predicated region body
PF: predicated region fallthrough
CT: control target
= control target key end

     0   :  { %7 = vsyncpa [#allocation5], 0  ;;  %s357_s0 = inlined_call_operand.hbm [shape: f32[35], index: 0, kind: input, shape index: {}]   ;;  %s358_s1 = inlined_call_operand.hbm [shape: f32[2,8], index: 1, kind: input, shape index: {}]   ;;  %s359_s2 = inlined_call_operand.hbm [shape: f32[2,8], index: 2, kind: output, shape index: {}]  }
   0x1   :  { %8 = vsyncpa [#allocation3], 0 }
   0x2   :  { %9 = vsyncpa [#allocation4], 0  ;;  %s300_s9 = smov [#allocation2]   ;;  %s301_s12 = smov [#allocation6]  }
   0x3   :  { %17 = dma.hbm_to_smem %s357_s0, 16, %s300_s9, [#allocation5]  }
   0x4   :  { %s24_s13 = sshll.u32 %s301_s12, 4  ;;  %s25_s13 = int_to_ptr.vmem [resolvable:$true] %s24_s13 }
   0x5   :  { %s262_s14 = scalar_lea.vmem %s25_s13, 32  ;;  %p267_p1 = scmp.lt.s32.totalorder %s25_s13, %s25_s13 }
   0x6   :  { %p263_p0 = scmp.ne.s32.totalorder %s25_s13, %s262_s14  ;;  %p268_p2 = scmp.lt.s32.totalorder %s262_s14, %s262_s14 }
   0x8   :  { %p269_p3 = por %p268_p2, %p267_p1 }
   0xa   :  { %p270_p4 = pnand %p269_p3, %p263_p0 }
   0xc   :  { %273 = shalt.err (!%p270_p4)
}
   0xd   :  { %27 = dma.hbm_to_vmem [thread:$0]  %s358_s1, 32, %s25_s13, [#allocation3]  }
   0xe   :  { %294 = dma.done.wait [#allocation5], 16  }
   0xf   :  { %295 = vsyncadd [#allocation5], 4294967280 }
  0x10   :  { %296 = dma.done.wait [#allocation3], 32  }
  0x11   :  { %297 = vsyncadd [#allocation3], 4294967264 }
  0x12   :  { %34 = sfence }
  0x13   :  { %s37_s0 = sld [smem:[#allocation2]]  ;;  %v35_v0 = vld [vmem:[#allocation6] sm:$0x1]  ;;  %v36_v1 = vld [vmem:[#allocation6 + $0x1] sm:$0x1]  ;;  %vm185_vm7 = vcmask 1040384  }
  0x14   :  { %s205_s17 = sld [smem:[#allocation2 + $0x4]]  ;;  %vm187_vm8 = vcmask 58368  }
  0x15   :  { %s206_s18 = sld [smem:[#allocation2 + $0x8]] }
  0x16   :  { %s207_s19 = sld [smem:[#allocation2 + $0x1]] }
  0x17   :  { %s208_s20 = sld [smem:[#allocation2 + $0x5]] }
  0x18   :  { %s209_s21 = sld [smem:[#allocation2 + $0x9]] }
  0x19   :  { %v38_v2 = vstv %s37_s0  ;;  %s210_s22 = sld [smem:[#allocation2 + $0x2]] }
  0x1a   :  { %v39_v3 = vmul.f32 %v38_v2, %v35_v0  ;;  %v41_v4 = vstv %s205_s17  ;;  %s211_s23 = sld [smem:[#allocation2 + $0x6]] }
  0x1b   :  { %v42_v5 = vmul.f32 %v41_v4, %v36_v1  ;;  %s324_s1 = sld [smem:[#allocation2 + $0xa]]  ;;  %v45_v6 = vstv %s206_s18 }
  0x1c   :  { %v48_v7 = vstv %s207_s19  ;;  %s213_s24 = sld [smem:[#allocation2 + $0x3]] }
  0x1d   :  { %v43_v8 = vadd.f32 %v42_v5, %v39_v3  ;;  %v49_v9 = vmul.f32 %v48_v7, %v35_v0  ;;  %v51_v10 = vstv %s208_s20  ;;  %s214_s25 = sld [smem:[#allocation2 + $0x7]] }
  0x1e   :  { %v52_v11 = vmul.f32 %v51_v10, %v36_v1  ;;  %s326_s26 = sld [smem:[#allocation2 + $0xb]]  ;;  %v55_v13 = vstv %s209_s21  ;;  %s302_s21 = smov [#allocation7]  }
  0x1f   :  { %v46_v12 = vadd.f32 %v45_v6, %v43_v8  ;;  %v58_v14 = vstv %s210_s22  ;;  %s216_s27 = sld [smem:[#allocation2 + $0xc]]  ;;  %s195_s22 = sshll.u32 %s302_s21, 4  ;;  %s196_s22 = int_to_ptr.vmem [resolvable:$true] %s195_s22 }
  0x20   :  { %v53_v15 = vadd.f32 %v52_v11, %v49_v9  ;;  %v59_v16 = vmul.f32 %v58_v14, %v35_v0  ;;  %v61_v17 = vstv %s211_s23  ;;  %s217_s28 = sld [smem:[#allocation2 + $0xf]]  ;;  %s274_s23 = scalar_lea.vmem %s196_s22, 32 }
  0x21   :  { %v62_v18 = vmul.f32 %v61_v17, %v36_v1  ;;  %vm77_vm0 = vcmp.ge.f32.partialorder %v46_v12, 0.0  ;;  %v78_v19 = vmul.f32 0.01, %v46_v12  ;;  %s328_s29 = sld [smem:[#allocation2 + $0x12]]  ;;  %v65_v21 = vstv %s324_s1  ;;  %p275_p5 = scmp.ne.s32.totalorder %s196_s22, %s274_s23 }
  0x22   :  { %v56_v20 = vadd.f32 %v55_v13, %v53_v15  ;;  %v68_v22 = vstv %s213_s24  ;;  %s331_s30 = sld [smem:[#allocation2 + $0x15]]  ;;  %p279_p6 = scmp.lt.s32.totalorder %s196_s22, %s196_s22 }
  0x23   :  { %v63_v23 = vadd.f32 %v62_v18, %v59_v16  ;;  %v69_v24 = vmul.f32 %v68_v22, %v35_v0  ;;  %v71_v25 = vstv %s214_s25  ;;  %v79_v26 = vsel %vm77_vm0, %v46_v12, %v78_v19  ;;  %s333_s3 = sld [smem:[#allocation2 + $0x18]]  ;;  %p280_p7 = scmp.lt.s32.totalorder %s274_s23, %s274_s23 }
  0x24   :  { %v72_v27 = vmul.f32 %v71_v25, %v36_v1  ;;  %vm80_vm1 = vcmp.ge.f32.partialorder %v56_v20, 0.0  ;;  %v81_v28 = vmul.f32 0.01, %v56_v20  ;;  %s221_s4 = sld [smem:[#allocation2 + $0xd]]  ;;  %v75_v30 = vstv %s326_s26 }
  0x25   :  { %v66_v29 = vadd.f32 %v65_v21, %v63_v23  ;;  %v90_v31 = vstv %s216_s27  ;;  %s222_s5 = sld [smem:[#allocation2 + $0x10]]  ;;  %p281_p8 = por %p280_p7, %p279_p6 }
  0x26   :  { %v73_v32 = vadd.f32 %v72_v27, %v69_v24  ;;  %v82_v33 = vsel %vm80_vm1, %v56_v20, %v81_v28  ;;  %v91_v34 = vmul.f32 %v90_v31, %v79_v26  ;;  %v93_v35 = vstv %s217_s28  ;;  %s223_s6 = sld [smem:[#allocation2 + $0x13]] }
  0x27   :  { %vm83_vm2 = vcmp.ge.f32.partialorder %v66_v29, 0.0  ;;  %v84_v36 = vmul.f32 0.01, %v66_v29  ;;  %v94_v37 = vmul.f32 %v93_v35, %v82_v33  ;;  %v97_v38 = vstv %s328_s29  ;;  %s224_s7 = sld [smem:[#allocation2 + $0x16]]  ;;  %p282_p9 = pnand %p281_p8, %p275_p5 }
  0x28   :  { %v76_v39 = vadd.f32 %v75_v30, %v73_v32  ;;  %s337_s8 = sld [smem:[#allocation2 + $0x19]]  ;;  %v101_v42 = vstv %s331_s30 }
  0x29   :  { %v85_v40 = vsel %vm83_vm2, %v66_v29, %v84_v36  ;;  %v95_v41 = vadd.f32 %v94_v37, %v91_v34  ;;  %s226_s9 = sld [smem:[#allocation2 + $0xe]]  ;;  %v105_v55 = vstv %s333_s3 }
  0x2a   :  { %vm86_vm3 = vcmp.ge.f32.partialorder %v76_v39, 0.0  ;;  %v87_v43 = vmul.f32 0.01, %v76_v39  ;;  %v98_v44 = vmul.f32 %v97_v38, %v85_v40  ;;  %v108_v45 = vstv %s221_s4  ;;  %s227_s10 = sld [smem:[#allocation2 + $0x11]] }
  0x2b   :  { %v109_v46 = vmul.f32 %v108_v45, %v79_v26  ;;  %v111_v47 = vstv %s222_s5  ;;  %s228_s11 = sld [smem:[#allocation2 + $0x14]] }
  0x2c   :  { %v88_v48 = vsel %vm86_vm3, %v76_v39, %v87_v43  ;;  %v99_v49 = vadd.f32 %v98_v44, %v95_v41  ;;  %v112_v50 = vmul.f32 %v111_v47, %v82_v33  ;;  %v115_v51 = vstv %s223_s6  ;;  %s229_s12 = sld [smem:[#allocation2 + $0x17]] }
  0x2d   :  { %v102_v52 = vmul.f32 %v101_v42, %v88_v48  ;;  %v116_v53 = vmul.f32 %v115_v51, %v85_v40  ;;  %v119_v54 = vstv %s224_s7  ;;  %s340_s13 = sld [smem:[#allocation2 + $0x1a]] }
  0x2e   :  { %v113_v56 = vadd.f32 %v112_v50, %v109_v46  ;;  %v120_v57 = vmul.f32 %v119_v54, %v88_v48  ;;  %s343_s14 = sld [smem:[#allocation2 + $0x1b]]  ;;  %v123_v0 = vstv %s337_s8 }
  0x2f   :  { %v103_v58 = vadd.f32 %v102_v52, %v99_v49  ;;  %v126_v59 = vstv %s226_s9  ;;  %s345_s15 = sld [smem:[#allocation2 + $0x1d]] }
  0x30   :  { %v117_v60 = vadd.f32 %v116_v53, %v113_v56  ;;  %v127_v61 = vmul.f32 %v126_v59, %v79_v26  ;;  %v129_v62 = vstv %s227_s10  ;;  %s348_s16 = sld [smem:[#allocation2 + $0x1f]] }
  0x31   :  { %v106_v63 = vadd.f32 %v105_v55, %v103_v58  ;;  %v130_v1 = vmul.f32 %v129_v62, %v82_v33  ;;  %v133_v2 = vstv %s228_s11  ;;  %s235_s0 = sld [smem:[#allocation2 + $0x1c]] }
  0x32   :  { %v121_v3 = vadd.f32 %v120_v57, %v117_v60  ;;  %v134_v4 = vmul.f32 %v133_v2, %v85_v40  ;;  %v137_v5 = vstv %s229_s12  ;;  %s236_s17 = sld [smem:[#allocation2 + $0x1e]] }
  0x33   :  { %v131_v6 = vadd.f32 %v130_v1, %v127_v61  ;;  %v138_v7 = vmul.f32 %v137_v5, %v88_v48  ;;  %vm143_vm4 = vcmp.ge.f32.partialorder %v106_v63, 0.0  ;;  %v144_v9 = vmul.f32 0.01, %v106_v63  ;;  %s237_s18 = sld [smem:[#allocation2 + $0x20]] }
  0x34   :  { %v124_v8 = vadd.f32 %v123_v0, %v121_v3  ;;  %v141_v11 = vstv %s340_s13  ;;  %v153_v12 = vstv %s343_s14  ;;  %s234_s19 = sld [smem:[#allocation2 + $0x21]] }
  0x35   :  { %v135_v10 = vadd.f32 %v134_v4, %v131_v6  ;;  %v145_v13 = vsel %vm143_vm4, %v106_v63, %v144_v9  ;;  %v156_v15 = vstv %s345_s15  ;;  %s238_s20 = sld [smem:[#allocation2 + $0x22]] }
  0x36   :  { %vm146_vm5 = vcmp.ge.f32.partialorder %v124_v8, 0.0  ;;  %v147_v14 = vmul.f32 0.01, %v124_v8  ;;  %v154_v18 = vmul.f32 %v153_v12, %v145_v13  ;;  %v160_v26 = vstv %s348_s16 }
  0x37   :  { %v139_v16 = vadd.f32 %v138_v7, %v135_v10  ;;  %v167_v19 = vstv %s235_s0 }
  0x38   :  { %v148_v17 = vsel %vm146_vm5, %v124_v8, %v147_v14  ;;  %v168_v22 = vmul.f32 %v167_v19, %v145_v13  ;;  %v170_v23 = vstv %s236_s17 }
  0x39   :  { %v142_v20 = vadd.f32 %v141_v11, %v139_v16  ;;  %v157_v21 = vmul.f32 %v156_v15, %v148_v17  ;;  %v171_v24 = vmul.f32 %v170_v23, %v148_v17  ;;  %v174_v27 = vstv %s237_s18 }
  0x3a   :  { %v164_v33 = vstv %s234_s19 }
  0x3b   :  { %vm149_vm6 = vcmp.ge.f32.partialorder %v142_v20, 0.0  ;;  %v150_v25 = vmul.f32 0.01, %v142_v20  ;;  %v158_v28 = vadd.f32 %v157_v21, %v154_v18  ;;  %v172_v29 = vadd.f32 %v171_v24, %v168_v22 }
  0x3c   :  { %v178_v34 = vstv %s238_s20 }
  0x3d   :  { %v151_v30 = vsel %vm149_vm6, %v142_v20, %v150_v25 }
  0x3e   :  { %v161_v31 = vmul.f32 %v160_v26, %v151_v30  ;;  %v175_v32 = vmul.f32 %v174_v27, %v151_v30 }
  0x40   :  { %v162_v35 = vadd.f32 %v161_v31, %v158_v28  ;;  %v176_v36 = vadd.f32 %v175_v32, %v172_v29 }
  0x42   :  { %v165_v37 = vadd.f32 %v164_v33, %v162_v35  ;;  %v179_v38 = vadd.f32 %v178_v34, %v176_v36 }
  0x44   :  { %242 = vtanh.f32 %v165_v37 }
  0x45   :  { %244 = vtanh.f32 %v179_v38 }
  0x51   :  { %v243_v39 = vpop.eup %242 }
  0x52   :  { %v245_v40 = vpop.eup %244 }
  0x53   :  { %v183_v41 = vrot.slane %v245_v40, 7 }
  0x55   :  { %v186_v42 = vsel %vm185_vm7, %v243_v39, %v183_v41 }
  0x56   :  { %188 = vst.msk [vmem:[#allocation7] sm:$0x3] %vm187_vm8, %v186_v42 }
  0x57   :  { %285 = shalt.err (!%p282_p9)
}
  0x58   :  { %198 = dma.vmem_to_hbm [thread:$0]  %s196_s22, 32, %s359_s2, [#allocation4]  }
  0x59   :  { %298 = dma.done.wait [#allocation4], 32  }
  0x5a   :  { %299 = vsyncadd [#allocation4], 4294967264 }
  0x5b   :  { %202 = vsyncpa [#allocation3], 1 }
  0x5c   :  { %203 = vsyncpa [#allocation4], 1 }
  0x5d   :  { %204 = vsyncpa [#allocation5], 1 }

</bundles_post_ra>
